<compile_context>
chip_gen: v7x
topology: tpu7x:2x2x1
jax: 0.10.0
libtpu: 0.0.40
codegen_flags: <defaults>
</compile_context>

<pallas_src>
import jax
import jax.numpy as jnp
from jax.experimental import pallas as pl
from jax.experimental.pallas import tpu as pltpu

BN_EPS = 1e-5
LANE = 128


def _round_up(n, m):
    return (n + m - 1) // m * m


def _multi_class_head_kernel(x_ref, w1_ref, b1_ref, gamma_ref, beta_ref,
                             w2_ref, b2_ref, out_ref, act_ref):
    """One grid step == one head. Activation carried in VMEM scratch.

    x_ref:     [B, Dp]      f32   (consumed only at step 0)
    w1_ref:    [1, Dp, Dp]  bf16  (this head's weight, streamed per step)
    b1_ref:    [1, 1, Dp]   f32
    gamma_ref: [1, 1, Dp]   f32
    beta_ref:  [1, 1, Dp]   f32
    w2_ref:    [Dp, Op]     bf16
    b2_ref:    [1, Op]      f32
    out_ref:   [B, Op]            (written on the last step only)
    act_ref:   [B, Dp]      f32   VMEM scratch, persists across the head axis
    """
    h = pl.program_id(0)
    num_heads = pl.num_programs(0)

    @pl.when(h == 0)
    def _():
        act_ref[...] = x_ref[...].astype(jnp.float32)

    x = act_ref[...]                                   # [B, Dp] f32
    inv_b = 1.0 / x.shape[0]

    # Linear: bf16 MXU inputs, f32 accumulation; bias add + ReLU in f32.
    y = jnp.dot(x.astype(jnp.bfloat16), w1_ref[0],
                preferred_element_type=jnp.float32) + b1_ref[0]
    y = jnp.maximum(y, 0.0)

    # BatchNorm1d (training mode, biased batch var) via one-pass moments.
    s1 = jnp.sum(y, axis=0, keepdims=True)             # [1, Dp]
    s2 = jnp.sum(y * y, axis=0, keepdims=True)         # [1, Dp]
    mean = s1 * inv_b
    var = jnp.maximum(s2 * inv_b - mean * mean, 0.0)   # guard cancellation
    act = (y - mean) * jax.lax.rsqrt(var + BN_EPS) * gamma_ref[0] + beta_ref[0]
    act_ref[...] = act

    # Final projection only on the last head.
    @pl.when(h == num_heads - 1)
    def _():
        out = jnp.dot(act.astype(jnp.bfloat16), w2_ref[...],
                      preferred_element_type=jnp.float32) + b2_ref[...]
        out_ref[...] = out.astype(out_ref.dtype)


def multi_class_head(x, w1, b1, gamma, beta, w2, b2):
    """x: [B, in_dim] -> [B, out_dim] (== MultiClassHead.forward, train-mode BN)."""
    B, in_dim = x.shape
    head_size = w1.shape[0]
    out_dim = w2.shape[1]

    Dp = _round_up(in_dim, LANE)
    Op = _round_up(out_dim, LANE)
    pd, po = Dp - in_dim, Op - out_dim

    # Lane-pad features / classes to 128; padded columns remain exactly zero
    # through every layer, so results are unchanged.
    xp = jnp.pad(x, ((0, 0), (0, pd))).astype(jnp.float32)
    w1p = jnp.pad(w1, ((0, 0), (0, pd), (0, pd))).astype(jnp.bfloat16)
    b1p = jnp.pad(b1, ((0, 0), (0, 0), (0, pd))).astype(jnp.float32)
    gp = jnp.pad(gamma, ((0, 0), (0, 0), (0, pd))).astype(jnp.float32)
    bp = jnp.pad(beta, ((0, 0), (0, 0), (0, pd))).astype(jnp.float32)
    w2p = jnp.pad(w2, ((0, pd), (0, po))).astype(jnp.bfloat16)
    b2p = jnp.pad(b2, ((0, 0), (0, po))).astype(jnp.float32)

    in_specs = [
        pl.BlockSpec((B, Dp), lambda h: (0, 0)),         # x (used at step 0)
        pl.BlockSpec((1, Dp, Dp), lambda h: (h, 0, 0)),  # w1[h] streamed
        pl.BlockSpec((1, 1, Dp), lambda h: (h, 0, 0)),   # b1[h]
        pl.BlockSpec((1, 1, Dp), lambda h: (h, 0, 0)),   # gamma[h]
        pl.BlockSpec((1, 1, Dp), lambda h: (h, 0, 0)),   # beta[h]
        pl.BlockSpec((Dp, Op), lambda h: (0, 0)),        # w2
        pl.BlockSpec((1, Op), lambda h: (0, 0)),         # b2
    ]
    out_specs = pl.BlockSpec((B, Op), lambda h: (0, 0))  # resident; written last

    # Per-step VMEM footprint (double-buffered inputs + output + scratch).
    block_bytes = (B * Dp * 4 + Dp * Dp * 2 + 3 * Dp * 4
                   + Dp * Op * 2 + Op * 4 + B * Op * 4)
    vmem_bytes = min(max(3 * block_bytes + (2 << 20), 16 << 20), 64 << 20)

    flops = 2 * B * Dp * Dp * head_size + 2 * B * Dp * Op
    bytes_accessed = (xp.size * 4 + w1p.size * 2
                      + (b1p.size + gp.size + bp.size + b2p.size) * 4
                      + w2p.size * 2 + B * Op * 4)

    out_padded = pl.pallas_call(
        _multi_class_head_kernel,
        out_shape=jax.ShapeDtypeStruct((B, Op), x.dtype),
        grid_spec=pltpu.PrefetchScalarGridSpec(
            num_scalar_prefetch=0,
            grid=(head_size,),
            in_specs=in_specs,
            out_specs=out_specs,
            scratch_shapes=[pltpu.VMEM((B, Dp), jnp.float32)],
        ),
        compiler_params=pltpu.CompilerParams(
            # Head axis carries state (activation scratch) -> sequential.
            dimension_semantics=("arbitrary",),
            vmem_limit_bytes=vmem_bytes,
        ),
        cost_estimate=pl.CostEstimate(
            flops=flops,
            transcendentals=head_size * Dp,
            bytes_accessed=bytes_accessed,
        ),
    )(xp, w1p, b1p, gp, bp, w2p, b2p)

    return out_padded[:, :out_dim]


def init_params(key, in_dim, out_dim, head_size):
    """PyTorch-default-style init (uniform +-1/sqrt(fan_in); BN gamma=1, beta=0)."""
    keys = jax.random.split(key, 4)
    bound1 = 1.0 / jnp.sqrt(in_dim)
    w1 = jax.random.uniform(keys[0], (head_size, in_dim, in_dim),
                            jnp.float32, -bound1, bound1)
    b1 = jax.random.uniform(keys[1], (head_size, 1, in_dim),
                            jnp.float32, -bound1, bound1)
    gamma = jnp.ones((head_size, 1, in_dim), jnp.float32)
    beta = jnp.zeros((head_size, 1, in_dim), jnp.float32)
    w2 = jax.random.uniform(keys[2], (in_dim, out_dim),
                            jnp.float32, -bound1, bound1)
    b2 = jax.random.uniform(keys[3], (1, out_dim),
                            jnp.float32, -bound1, bound1)
    return w1, b1, gamma, beta, w2, b2


def reference_forward(x, w1, b1, gamma, beta, w2, b2):
    """Pure-JAX reference: same math as the PyTorch module (train-mode BN),
    executed with the same precision policy (bf16 matmul inputs, f32 acc)."""
    h = x.astype(jnp.float32)
    for i in range(w1.shape[0]):
        y = jnp.dot(h.astype(jnp.bfloat16), w1[i].astype(jnp.bfloat16),
                    preferred_element_type=jnp.float32) + b1[i]
        y = jnp.maximum(y, 0.0)
        mean = jnp.mean(y, axis=0, keepdims=True)
        var = jnp.mean((y - mean) ** 2, axis=0, keepdims=True)
        h = (y - mean) / jnp.sqrt(var + BN_EPS) * gamma[i] + beta[i]
    return jnp.dot(h.astype(jnp.bfloat16), w2.astype(jnp.bfloat16),
                   preferred_element_type=jnp.float32) + b2


if __name__ == "__main__":
    B, IN_DIM, OUT_DIM, HEAD_SIZE = 8, 32, 10, 2

    key = jax.random.PRNGKey(0)
    k_x, k_p = jax.random.split(key)
    x = jax.random.normal(k_x, (B, IN_DIM), jnp.float32)
    params = init_params(k_p, IN_DIM, OUT_DIM, HEAD_SIZE)

    out = multi_class_head(x, *params)
    out = jax.block_until_ready(out)

    ref = reference_forward(x, *params)
    assert out.shape == (B, OUT_DIM)
    assert jnp.allclose(out, ref, atol=1e-2, rtol=1e-2), "mismatch vs reference"

    print("KERNEL_OK")
</pallas_src>

<mosaic_0001>
module attributes {stable_mosaic.version = 11 : i64} {
  func.func @_multi_class_head_kernel(%arg0: i32, %arg1: memref<8x128xf32, #tpu.memory_space<vmem>>, %arg2: memref<1x128x128xbf16, #tpu.memory_space<vmem>>, %arg3: memref<1x1x128xf32, #tpu.memory_space<vmem>>, %arg4: memref<1x1x128xf32, #tpu.memory_space<vmem>>, %arg5: memref<1x1x128xf32, #tpu.memory_space<vmem>>, %arg6: memref<128x128xbf16, #tpu.memory_space<vmem>>, %arg7: memref<1x128xf32, #tpu.memory_space<vmem>>, %arg8: memref<8x128xf32, #tpu.memory_space<vmem>>, %arg9: memref<8x128xf32, #tpu.memory_space<vmem>>) attributes {dimension_semantics = [#tpu.dimension_semantics<arbitrary>], iteration_bounds = array<i64: 2>, scalar_prefetch = 0 : i64, scratch_operands = 1 : i64, tpu.core_type = #tpu.core_type<tc>, window_params = [{pipeline_mode = #tpu.pipeline_mode<synchronous>, transform_indices = @transform_0, window_bounds = array<i64: 8, 128>}, {transform_indices = @transform_1, window_bounds = array<i64: 1, 128, 128>}, {transform_indices = @transform_2, window_bounds = array<i64: 1, 1, 128>}, {transform_indices = @transform_3, window_bounds = array<i64: 1, 1, 128>}, {transform_indices = @transform_4, window_bounds = array<i64: 1, 1, 128>}, {pipeline_mode = #tpu.pipeline_mode<synchronous>, transform_indices = @transform_5, window_bounds = array<i64: 128, 128>}, {pipeline_mode = #tpu.pipeline_mode<synchronous>, transform_indices = @transform_6, window_bounds = array<i64: 1, 128>}, {pipeline_mode = #tpu.pipeline_mode<synchronous>, transform_indices = @transform_7, window_bounds = array<i64: 8, 128>}]} {
    %c0_i32 = arith.constant 0 : i32
    %0 = arith.cmpi eq, %arg0, %c0_i32 : i32
    %1 = arith.extui %0 : i1 to i32
    %c0_i32_0 = arith.constant 0 : i32
    %2 = arith.cmpi ne, %1, %c0_i32_0 : i32
    scf.if %2 {
      %c0_24 = arith.constant 0 : index
      %c0_25 = arith.constant 0 : index
      %46 = vector.load %arg1[%c0_24, %c0_25] : memref<8x128xf32, #tpu.memory_space<vmem>>, vector<8x128xf32>
      %c0_26 = arith.constant 0 : index
      %c0_27 = arith.constant 0 : index
      %47 = vector.load %arg9[%c0_26, %c0_27] : memref<8x128xf32, #tpu.memory_space<vmem>>, vector<8x128xf32>
      tpu.vector_store %arg9[%c0_26, %c0_27], %46 {strides = array<i32>} : memref<8x128xf32, #tpu.memory_space<vmem>>, vector<8x128xf32>,
    } else {
    }
    %c0 = arith.constant 0 : index
    %c0_1 = arith.constant 0 : index
    %3 = vector.load %arg9[%c0, %c0_1] : memref<8x128xf32, #tpu.memory_space<vmem>>, vector<8x128xf32>
    %4 = arith.truncf %3 : vector<8x128xf32> to vector<8x128xbf16>
    %c0_2 = arith.constant 0 : index
    %c0_3 = arith.constant 0 : index
    %c0_4 = arith.constant 0 : index
    %5 = vector.load %arg2[%c0_2, %c0_3, %c0_4] : memref<1x128x128xbf16, #tpu.memory_space<vmem>>, vector<1x128x128xbf16>
    %6 = vector.shape_cast %5 : vector<1x128x128xbf16> to vector<128x128xbf16>
    %cst = arith.constant dense<0.000000e+00> : vector<8x128xf32>
    %7 = tpu.matmul %4, %6, %cst {dimension_numbers = #tpu.dot_dimension_numbers<[1], [0], [0], [1], [0, 0, 1, 1], [], []>} : vector<8x128xbf16>, vector<128x128xbf16>, vector<8x128xf32> -> vector<8x128xf32>
    %c0_5 = arith.constant 0 : index
    %c0_6 = arith.constant 0 : index
    %c0_7 = arith.constant 0 : index
    %8 = vector.load %arg3[%c0_5, %c0_6, %c0_7] : memref<1x1x128xf32, #tpu.memory_space<vmem>>, vector<1x1x128xf32>
    %9 = vector.shape_cast %8 : vector<1x1x128xf32> to vector<1x128xf32>
    %10 = vector.broadcast %9 : vector<1x128xf32> to vector<8x128xf32>
    %11 = arith.addf %7, %10 : vector<8x128xf32>
    %cst_8 = arith.constant 0.000000e+00 : f32
    %12 = vector.broadcast %cst_8 : f32 to vector<8x128xf32>
    %13 = arith.maximumf %11, %12 : vector<8x128xf32>
    %cst_9 = arith.constant dense<0.000000e+00> : vector<128xf32>
    %14 = vector.multi_reduction <add>, %13, %cst_9 [0] : vector<8x128xf32> to vector<128xf32>
    %15 = vector.shape_cast %14 : vector<128xf32> to vector<1x128xf32>
    %16 = arith.mulf %13, %13 : vector<8x128xf32>
    %cst_10 = arith.constant dense<0.000000e+00> : vector<128xf32>
    %17 = vector.multi_reduction <add>, %16, %cst_10 [0] : vector<8x128xf32> to vector<128xf32>
    %18 = vector.shape_cast %17 : vector<128xf32> to vector<1x128xf32>
    %cst_11 = arith.constant 1.250000e-01 : f32
    %19 = vector.broadcast %cst_11 : f32 to vector<1x128xf32>
    %20 = arith.mulf %15, %19 : vector<1x128xf32>
    %cst_12 = arith.constant 1.250000e-01 : f32
    %21 = vector.broadcast %cst_12 : f32 to vector<1x128xf32>
    %22 = arith.mulf %18, %21 : vector<1x128xf32>
    %23 = arith.mulf %20, %20 : vector<1x128xf32>
    %24 = arith.subf %22, %23 : vector<1x128xf32>
    %cst_13 = arith.constant 0.000000e+00 : f32
    %25 = vector.broadcast %cst_13 : f32 to vector<1x128xf32>
    %26 = arith.maximumf %24, %25 : vector<1x128xf32>
    %27 = vector.broadcast %20 : vector<1x128xf32> to vector<8x128xf32>
    %28 = arith.subf %13, %27 : vector<8x128xf32>
    %cst_14 = arith.constant 9.99999974E-6 : f32
    %29 = vector.broadcast %cst_14 : f32 to vector<1x128xf32>
    %30 = arith.addf %26, %29 : vector<1x128xf32>
    %31 = math.rsqrt %30 : vector<1x128xf32>
    %32 = vector.broadcast %31 : vector<1x128xf32> to vector<8x128xf32>
    %33 = arith.mulf %28, %32 : vector<8x128xf32>
    %c0_15 = arith.constant 0 : index
    %c0_16 = arith.constant 0 : index
    %c0_17 = arith.constant 0 : index
    %34 = vector.load %arg4[%c0_15, %c0_16, %c0_17] : memref<1x1x128xf32, #tpu.memory_space<vmem>>, vector<1x1x128xf32>
    %35 = vector.shape_cast %34 : vector<1x1x128xf32> to vector<1x128xf32>
    %36 = vector.broadcast %35 : vector<1x128xf32> to vector<8x128xf32>
    %37 = arith.mulf %33, %36 : vector<8x128xf32>
    %c0_18 = arith.constant 0 : index
    %c0_19 = arith.constant 0 : index
    %c0_20 = arith.constant 0 : index
    %38 = vector.load %arg5[%c0_18, %c0_19, %c0_20] : memref<1x1x128xf32, #tpu.memory_space<vmem>>, vector<1x1x128xf32>
    %39 = vector.shape_cast %38 : vector<1x1x128xf32> to vector<1x128xf32>
    %40 = vector.broadcast %39 : vector<1x128xf32> to vector<8x128xf32>
    %41 = arith.addf %37, %40 : vector<8x128xf32>
    %c0_21 = arith.constant 0 : index
    %c0_22 = arith.constant 0 : index
    %42 = vector.load %arg9[%c0_21, %c0_22] : memref<8x128xf32, #tpu.memory_space<vmem>>, vector<8x128xf32>
    tpu.vector_store %arg9[%c0_21, %c0_22], %41 {strides = array<i32>} : memref<8x128xf32, #tpu.memory_space<vmem>>, vector<8x128xf32>,
    %c1_i32 = arith.constant 1 : i32
    %43 = arith.cmpi eq, %arg0, %c1_i32 : i32
    %44 = arith.extui %43 : i1 to i32
    %c0_i32_23 = arith.constant 0 : i32
    %45 = arith.cmpi ne, %44, %c0_i32_23 : i32
    scf.if %45 {
      %46 = arith.truncf %41 : vector<8x128xf32> to vector<8x128xbf16>
      %c0_24 = arith.constant 0 : index
      %c0_25 = arith.constant 0 : index
      %47 = vector.load %arg6[%c0_24, %c0_25] : memref<128x128xbf16, #tpu.memory_space<vmem>>, vector<128x128xbf16>
      %cst_26 = arith.constant dense<0.000000e+00> : vector<8x128xf32>
      %48 = tpu.matmul %46, %47, %cst_26 {dimension_numbers = #tpu.dot_dimension_numbers<[1], [0], [0], [1], [0, 0, 1, 1], [], []>} : vector<8x128xbf16>, vector<128x128xbf16>, vector<8x128xf32> -> vector<8x128xf32>
      %c0_27 = arith.constant 0 : index
      %c0_28 = arith.constant 0 : index
      %49 = vector.load %arg7[%c0_27, %c0_28] : memref<1x128xf32, #tpu.memory_space<vmem>>, vector<1x128xf32>
      %50 = vector.broadcast %49 : vector<1x128xf32> to vector<8x128xf32>
      %51 = arith.addf %48, %50 : vector<8x128xf32>
      %c0_29 = arith.constant 0 : index
      %c0_30 = arith.constant 0 : index
      %52 = vector.load %arg8[%c0_29, %c0_30] : memref<8x128xf32, #tpu.memory_space<vmem>>, vector<8x128xf32>
      tpu.vector_store %arg8[%c0_29, %c0_30], %51 {strides = array<i32>} : memref<8x128xf32, #tpu.memory_space<vmem>>, vector<8x128xf32>,
    } else {
    }
    return
  }
  func.func @transform_0(%arg0: i32) -> (i32, i32) {
    %c0_i32 = arith.constant 0 : i32
    %c0_i32_0 = arith.constant 0 : i32
    %c0_i32_1 = arith.constant 0 : i32
    return %c0_i32, %c0_i32_0 : i32, i32
  }
  func.func @transform_1(%arg0: i32) -> (i32, i32, i32) {
    %c0_i32 = arith.constant 0 : i32
    %c0_i32_0 = arith.constant 0 : i32
    %c0_i32_1 = arith.constant 0 : i32
    return %arg0, %c0_i32, %c0_i32_0 : i32, i32, i32
  }
  func.func @transform_2(%arg0: i32) -> (i32, i32, i32) {
    %c0_i32 = arith.constant 0 : i32
    %c0_i32_0 = arith.constant 0 : i32
    %c0_i32_1 = arith.constant 0 : i32
    return %arg0, %c0_i32, %c0_i32_0 : i32, i32, i32
  }
  func.func @transform_3(%arg0: i32) -> (i32, i32, i32) {
    %c0_i32 = arith.constant 0 : i32
    %c0_i32_0 = arith.constant 0 : i32
    %c0_i32_1 = arith.constant 0 : i32
    return %arg0, %c0_i32, %c0_i32_0 : i32, i32, i32
  }
  func.func @transform_4(%arg0: i32) -> (i32, i32, i32) {
    %c0_i32 = arith.constant 0 : i32
    %c0_i32_0 = arith.constant 0 : i32
    %c0_i32_1 = arith.constant 0 : i32
    return %arg0, %c0_i32, %c0_i32_0 : i32, i32, i32
  }
  func.func @transform_5(%arg0: i32) -> (i32, i32) {
    %c0_i32 = arith.constant 0 : i32
    %c0_i32_0 = arith.constant 0 : i32
    %c0_i32_1 = arith.constant 0 : i32
    return %c0_i32, %c0_i32_0 : i32, i32
  }
  func.func @transform_6(%arg0: i32) -> (i32, i32) {
    %c0_i32 = arith.constant 0 : i32
    %c0_i32_0 = arith.constant 0 : i32
    %c0_i32_1 = arith.constant 0 : i32
    return %c0_i32, %c0_i32_0 : i32, i32
  }
  func.func @transform_7(%arg0: i32) -> (i32, i32) {
    %c0_i32 = arith.constant 0 : i32
    %c0_i32_0 = arith.constant 0 : i32
    %c0_i32_1 = arith.constant 0 : i32
    return %c0_i32, %c0_i32_0 : i32, i32
  }
}

</mosaic_0001>

<bundles_post_ra>
// kernel: tpu_custom_call.1
= control target key start
LH: loop header
LB: loop body
LE: loop exit
PB: predicated region body
PF: predicated region fallthrough
CT: control target
= control target key end

     0   :  { %12 = vsyncpa [#allocation4], 0  ;;  %s1386_s0 = inlined_call_operand.hbm [shape: f32[8,128], index: 0, kind: input, shape index: {}]   ;;  %s1387_s1 = inlined_call_operand.hbm [shape: bf16[2,128,128], index: 1, kind: input, shape index: {}]   ;;  %s1388_s2 = inlined_call_operand.vmem [shape: f32[2,1,128], index: 2, kind: input, shape index: {}]   ;;  %s1389_s3 = inlined_call_operand.vmem [shape: f32[2,1,128], index: 3, kind: input, shape index: {}]   ;;  %s1390_s4 = inlined_call_operand.vmem [shape: f32[2,1,128], index: 4, kind: input, shape index: {}]   ;;  %s1391_s5 = inlined_call_operand.hbm [shape: bf16[128,128], index: 5, kind: input, shape index: {}]   ;;  %s1392_s6 = inlined_call_operand.vmem [shape: f32[1,128], index: 6, kind: input, shape index: {}]   ;;  %s1393_s7 = inlined_call_operand.hbm [shape: f32[8,128], index: 7, kind: output, shape index: {}]  }
   0x1   :  { %13 = vsyncpa [#allocation7], 0 }
   0x2   :  { %15 = vsyncpa [#allocation7 + $0x1], 0 }
   0x3   :  { %16 = vsyncpa [#allocation5], 0  ;;  %s1134_s24 = smov 0   ;;  %s1136_s25 = smov 0  }
   0x4   :  { %s1138_s26 = smov 0   ;;  %s1140_s27 = smov 0  }
   0x5 LB: > { %s1153_s28 = sadd.s32 4294967295, %s1082_s27   ;;  %s1156_s29 = sadd.s32 1, %s1082_s27   ;;  %s1082_s27 = sphi %s1140_s27, %s1415_s27   ;;  %s1078_s26 = sphi %s1138_s26, %s1419_s26   ;;  %s1074_s25 = sphi %s1136_s25, %s1418_s25   ;;  %s1070_s24 = sphi %s1134_s24, %s1417_s24  }
   0x6   : > { %1400 = sst [smem:[#allocation14_spill]] %s1156_s29  ;;  %s47_s30 = ssub.s32 %s1082_s27, %s1156_s29 }
   0x7   : > { %s50_s8 = sadd.s32 1, %s1078_s26  ;;  %p48_p0 = scmp.eq.s32.totalorder %s47_s30, 0 }
   0x8   : > { %p57_p1 = scmp.ne.s32.totalorder %s1078_s26, %s1074_s25  ;;  %p58_p2 = scmp.eq.s32.totalorder %s1082_s27, 0 }
   0x9   : > { %p63_p3 = scmp.ne.s32.totalorder %s1074_s25, %s1070_s24  ;;  %p1394_p5 = scmp.eq.s32.totalorder %s1153_s28, 0 }
   0xa   : > { %s1166_s9 = scalar_select %p48_p0, %s1078_s26, %s50_s8  }
   0xb   : > { %p1168_p4 = por %p58_p2, %p57_p1  ;;  %p737_p6 = scmp.ge.s32.totalorder %s1082_s27, 1 }
   0xc   : > { %1401 = sst [smem:[#allocation15_spill]] %s1166_s9  ;;  %p215_p7 = scmp.lt.s32.totalorder %s1082_s27, 3 }
   0xd   : > { %p1177_p8 = por %p1394_p5, %p63_p3  ;;  %s1084_s13 = smov [#allocation8]  }
   0xe   : > { %p1182_p10 = pnand %p737_p6, %p215_p7  ;;  %s238_s14 = sshll.u32 %s1084_s13, 4  ;;  %s239_s14 = int_to_ptr.vmem [resolvable:$true] %s238_s14 }
   0xf   : > { %s1403_s11 = scalar_select %p1177_p8, 1, 0 }
  0x10   : > { %s1404_s12 = scalar_select %p1182_p10, 1, 0 }
  0x11   : > { %p847_p11 = pneg %p1182_p10  ;;  %p860_p13 = scmp.lt.s32.totalorder %s1082_s27, 2 }
  0x12   : > { %s924_s19 = scalar_lea.hbm %s1391_s5, 1024 }
  0x13   : > { %p1190_p12 = pnand %p847_p11, %p1394_p5  ;;  %p1197_p0 = pnand %p860_p13, %p1168_p4 }
  0x14   : > { %p925_p1 = scmp.ne.s32.totalorder %s1391_s5, %s924_s19  ;;  %p931_p4 = scmp.lt.u32.totalorder %s924_s19, %s1391_s5 }
  0x15   : > { %s1406_s16 = scalar_select %p1197_p0, 1, 0 }
  0x16   : > { %p926_p2 = pneg %p1190_p12 }
  0x18   : > { %p927_p3 = pnand %p926_p2, %p925_p1 }
  0x1a   : > { %p928_p6 = pneg %p927_p3 }
  0x1c   : > { %p933_p7 = pnand %p931_p4, %p928_p6 }
  0x1e   : > { %936 = shalt.err (!%p933_p7)
}
  0x1f   : > { %s937_s24 = scalar_lea.vmem %s239_s14, 1024  ;;  %p945_p5 = scmp.lt.s32.totalorder %s239_s14, %s239_s14 }
  0x20   : > { %p938_p11 = scmp.ne.s32.totalorder %s239_s14, %s937_s24  ;;  %p946_p8 = scmp.lt.s32.totalorder %s937_s24, %s937_s24 }
  0x22   : > { %p940_p13 = pnand %p938_p11, %p926_p2  ;;  %p947_p10 = por %p946_p8, %p945_p5 }
  0x24   : > { %p941_p9 = pneg %p940_p13 }
  0x26   : > { %p948_p0 = pnand %p947_p10, %p941_p9 }
  0x28   : > { %951 = shalt.err (!%p948_p0)
}
  0x29   : > { %s1085_s30 = smov 64   ;;  %s1086_s8 = smov 4  }
  0x2a   : > { %853 = dma.hbm_to_vmem [thread:$0]  (!%p1190_p12), %s1391_s5, 1024, %s239_s14, [#allocation7], %s1085_s30, %s1085_s30, %s1086_s8  }
  0x2b   : > { %s1087_s17 = smov [#allocation3]   ;;  %s255_s19 = sand.u32 1, %s1082_s27  }
  0x2c   : > { %s228_s18 = sshll.u32 %s1087_s17, 4  ;;  %s952_s22 = scalar_lea.hbm %s1386_s0, 128  ;;  %s229_s18 = int_to_ptr.vmem [resolvable:$true] %s228_s18 }
  0x2d   : > { %p953_p5 = scmp.ne.s32.totalorder %s1386_s0, %s952_s22  ;;  %p959_p10 = scmp.lt.u32.totalorder %s952_s22, %s1386_s0 }
  0x2f   : > { %p955_p8 = pnand %p953_p5, %p926_p2 }
  0x31   : > { %p956_p9 = pneg %p955_p8 }
  0x33   : > { %p961_p0 = pnand %p959_p10, %p956_p9 }
  0x35   : > { %964 = shalt.err (!%p961_p0)
}
  0x36   : > { %s965_s14 = scalar_lea.vmem %s229_s18, 128  ;;  %p973_p4 = scmp.lt.s32.totalorder %s229_s18, %s229_s18 }
  0x37   : > { %p966_p1 = scmp.ne.s32.totalorder %s229_s18, %s965_s14  ;;  %p974_p7 = scmp.lt.s32.totalorder %s965_s14, %s965_s14 }
  0x39   : > { %p968_p3 = pnand %p966_p1, %p926_p2  ;;  %p975_p11 = por %p974_p7, %p973_p4 }
  0x3b   : > { %p969_p6 = pneg %p968_p3 }
  0x3d   : > { %p976_p13 = pnand %p975_p11, %p969_p6 }
  0x3f   : > { %979 = shalt.err (!%p976_p13)
}
  0x40   : > { %850 = dma.hbm_to_vmem [thread:$0]  (!%p1190_p12), %s1386_s0, 128, %s229_s18, [#allocation4]  }
  0x41   : > { %s257_s29 = sand.u32 1, %s1078_s26   ;;  %s774_s9 = sshll.u32 %s1082_s27, 10 }
  0x42   : > { %s741_s17 = sshll.u32 %s257_s29, 6  ;;  %s1252_s22 = scalar_lea.hbm %s1387_s1, %s774_s9 }
  0x43   : > { %s259_s15 = scalar_lea.vmem [#allocation6], %s741_s17  ;;  %s1256_s24 = scalar_lea.sflag [#allocation7], %s255_s19 }
  0x44   : > { %s266_s23 = sshll.u32 %s259_s15, 4  ;;  %s980_s14 = scalar_lea.hbm %s1252_s22, 1024  ;;  %s1254_s23 = int_to_ptr.vmem [resolvable:$true] %s266_s23 }
  0x45   : > { %p981_p12 = scmp.ne.s32.totalorder %s1252_s22, %s980_s14  ;;  %p1407_p2 = scmp.ne.s32.totalorder %s1406_s16, 0 }
  0x46   : > { %s985_s10 = scalar_lea.hbm %s1387_s1, 2048  ;;  %p986_p10 = scmp.lt.u32.totalorder %s1252_s22, %s1387_s1 }
  0x47   : > { %p982_p5 = pneg %p1407_p2  ;;  %p987_p0 = scmp.lt.u32.totalorder %s985_s10, %s980_s14 }
  0x48   : > { %p989_p3 = scmp.lt.u32.totalorder %s980_s14, %s1252_s22 }
  0x49   : > { %p983_p8 = pnand %p982_p5, %p981_p12  ;;  %p988_p1 = por %p987_p0, %p986_p10 }
  0x4b   : > { %p984_p9 = pneg %p983_p8  ;;  %p990_p6 = por %p989_p3, %p988_p1 }
  0x4d   : > { %p991_p4 = pnand %p990_p6, %p984_p9 }
  0x4f   : > { %994 = shalt.err (!%p991_p4)
}
  0x50   : > { %s995_s19 = scalar_lea.vmem %s1254_s23, 1024  ;;  %s1088_s9 = smov [#allocation6]  }
  0x51   : > { %p996_p7 = scmp.ne.s32.totalorder %s1254_s23, %s995_s19  ;;  %s1000_s17 = sshll.u32 %s1088_s9, 4  ;;  %s1001_s17 = int_to_ptr.vmem [resolvable:$false] %s1000_s17 }
  0x52   : > { %s1002_s20 = scalar_lea.vmem %s1001_s17, 2048  ;;  %p1003_p12 = scmp.lt.s32.totalorder %s1254_s23, %s1001_s17 }
  0x53   : > { %p998_p11 = pnand %p996_p7, %p982_p5  ;;  %p1004_p8 = scmp.lt.s32.totalorder %s1002_s20, %s995_s19 }
  0x55   : > { %p999_p13 = pneg %p998_p11  ;;  %p1005_p10 = por %p1004_p8, %p1003_p12 }
  0x57   : > { %p1006_p0 = pnand %p1005_p10, %p999_p13 }
  0x59   : > { %1009 = shalt.err (!%p1006_p0)
}
  0x5a   : > { %857 = dma.hbm_to_vmem [thread:$0]  (!%p1407_p2), %s1252_s22, 1024, %s1254_s23, %s1256_s24, %s1085_s30, %s1085_s30, %s1086_s8  }
  0x5b   : > { %p1408_p5 = scmp.ne.s32.totalorder %s1404_s12, 0 }
  0x5c   : > { %p1409_p9 = scmp.eq.s32.totalorder (!%p1408_p5), %s1153_s28, 0 }
  0x5d   : > { %296 = sbr.rel (%p1408_p5) target bundleno = 649 (0x289), region = 48 }
  0x64   : > { %1053 = dma.done.wait (%p1409_p9), [#allocation4], 128   ;;  %p1410_p1 = pmov %p1409_p9 }
  0x65   : > { %s302_s16 = sand.u32 1, %s1153_s28   ;;  %s304_s21 = sand.u32 1, %s1074_s25  }
  0x66   : > { %1055 = vsyncadd (%p1410_p1), [#allocation4], 4294967168  ;;  %s746_s15 = sshll.u32 %s304_s21, 6  ;;  %s303_s14 = scalar_lea.sflag [#allocation7], %s302_s16 }
  0x67   : > { %s1295_s27 = scalar_lea.vmem [#allocation6], %s746_s15  ;;  %p1411_p3 = scmp.ne.s32.totalorder %s1403_s11, 0 }
  0x69   : > { %1057 = dma.done.wait (%p1411_p3), %s303_s14, 1024  }
  0x6a   : > { %1059 = vsyncadd (%p1411_p3), %s303_s14, 4294966272  ;;  %p1412_p2 = pmov %p1410_p1 }
  0x6b   : > { %p1413_p6 = pmov %p1410_p1 }
  0x6c   : > { %1061 = dma.done.wait (%p1412_p2), [#allocation7], 1024  }
  0x6d   : > { %1063 = vsyncadd (%p1413_p6), [#allocation7], 4294966272  ;;  %p345_p4 = scmp.lt.s32.totalorder %s1153_s28, 1  ;;  %p1414_p7 = scmp.ne.s32.totalorder %s1153_s28, 0 }
  0x6e   : > { %v359_v0 = vld [vmem:[#allocation3] sm:$0xff] (!%p1414_p7) }
  0x6f   : > { %s1307_s12 = scalar_select %p345_p4, %s1153_s28, 1 }
  0x70   : > { %358 = sbr.rel (%p1414_p7) target bundleno = 119 (0x77), region = 64  ;;  %360 = vst [vmem:[#allocation2] sm:$0xff] (!%p1414_p7), %v359_v0 }
  0x71   : > { %s347_s22 = scalar_lea.vmem %s1388_s2, %s1307_s12  ;;  %s350_s24 = scalar_lea.vmem %s1389_s3, %s1307_s12 }
  0x72   : > { %s353_s13 = scalar_lea.vmem %s1390_s4, %s1307_s12 }
  0x77 PF: > { %v906_v1 = vld [vmem:[%s1295_s27] sm:$0xff]   ;;  %v1089_v2 = vmov 0.0   ;;  %v907_v3 = vld [vmem:[%s1295_s27 + $0x8] sm:$0xff]   ;;  %vm1090_vm0 = vmmov 0   ;;  %v908_v4 = vld [vmem:[%s1295_s27 + $0x10] sm:$0xff]   ;;  %p760_p11 = scmp.ne.s32.totalorder %s1153_s28, 1 }
  0x78   : > { %793 = vmatprep.subr.bf16.mxu0 %v1089_v2  ;;  %809 = vmatprep.mubr.msk.bf16.mxu0 %vm1090_vm0, %v1089_v2  ;;  %v909_v5 = vld [vmem:[%s1295_s27 + $0x18] sm:$0xff]   ;;  %v910_v6 = vld [vmem:[%s1295_s27 + $0x20] sm:$0xff]   ;;  %v911_v7 = vld [vmem:[%s1295_s27 + $0x28] sm:$0xff]   ;;  %v1091_v46 = vmov (!%p760_p11), 0.0   ;;  %vm1092_vm1 = vmmov (!%p760_p11), 0  }
  0x79   : > { %794 = vmatpush3.bf16.msra.mxu0 %v906_v1  ;;  %v912_v8 = vld [vmem:[%s1295_s27 + $0x30] sm:$0xff]   ;;  %v913_v9 = vld [vmem:[%s1295_s27 + $0x38] sm:$0xff]   ;;  %v916_v45 = vld [vmem:[#allocation8] sm:$0xff] (!%p760_p11)  }
  0x7a   : > { %795 = vmatprep.subr.bf16.mxu0 %v1089_v2  ;;  %v361_v10 = vld [vmem:[#allocation2] sm:$0xff]  ;;  %v917_v47 = vld [vmem:[#allocation8 + $0x8] sm:$0xff] (!%p760_p11)   ;;  %v919_v49 = vld [vmem:[#allocation8 + $0x18] sm:$0xff] (!%p760_p11)  }
  0x7b   : > { %v362_v11 = vpack.c.bf16 %v361_v10, %v361_v10  ;;  %v749_v12 = vld [vmem:[%s347_s22] ss:$0 sm:$0xff]  ;;  %v920_v50 = vld [vmem:[#allocation8 + $0x20] sm:$0xff] (!%p760_p11)   ;;  %v921_v51 = vld [vmem:[#allocation8 + $0x28] sm:$0xff] (!%p760_p11)  }
  0x7c   : > { %v758_v40 = vld [vmem:[%s350_s24] ss:$0 sm:$0xff]  ;;  %v923_v53 = vld [vmem:[#allocation8 + $0x38] sm:$0xff] (!%p760_p11)  }
  0x7d   : > { %796 = vmatpush3.bf16.msra.mxu0 %v907_v3  ;;  %v759_v42 = vld [vmem:[%s353_s13] ss:$0 sm:$0xff] }
  0x7e   : > { %797 = vmatprep.subr.bf16.mxu0 %v1089_v2  ;;  %v918_v48 = vld [vmem:[#allocation8 + $0x10] sm:$0xff] (!%p760_p11)  }
  0x7f   : > { %v922_v52 = vld [vmem:[#allocation8 + $0x30] sm:$0xff] (!%p760_p11)  }
  0x80   : > { %v761_v55 = vld [vmem:[%s1392_s6] ss:$0 sm:$0xff] (!%p760_p11) }
  0x81   : > { %798 = vmatpush3.bf16.msra.mxu0 %v908_v4 }
  0x82   : > { %799 = vmatprep.subr.bf16.mxu0 %v1089_v2 }
  0x85   : > { %800 = vmatpush3.bf16.msra.mxu0 %v909_v5 }
  0x86   : > { %801 = vmatprep.subr.bf16.mxu0 %v1089_v2 }
  0x89   : > { %802 = vmatpush3.bf16.msra.mxu0 %v910_v6 }
  0x8a   : > { %803 = vmatprep.subr.bf16.mxu0 %v1089_v2 }
  0x8d   : > { %804 = vmatpush3.bf16.msra.mxu0 %v911_v7 }
  0x8e   : > { %805 = vmatprep.subr.bf16.mxu0 %v1089_v2 }
  0x91   : > { %806 = vmatpush3.bf16.msra.mxu0 %v912_v8 }
  0x92   : > { %807 = vmatprep.subr.bf16.mxu0 %v1089_v2 }
  0x95   : > { %808 = vmatpush3.bf16.msra.mxu0 %v913_v9 }
  0x96   : > { %813 = vmatprep.subr.bf16.mxu0 (!%p760_p11), %v1091_v46 }
  0x98   : > { %810 = vmatmul.mubr.bf16.vlgmr.msra.gmra.mrb[0].mxu0 %v362_v11 }
  0x99   : > { %814 = vmatpush3.bf16.msra.mxu0 (!%p760_p11), %v916_v45  ;;  %829 = vmatprep.mubr.msk.bf16.mxu0 (!%p760_p11), %vm1092_vm1, %v1091_v46 }
  0x9a   : > { %815 = vmatprep.subr.bf16.mxu0 (!%p760_p11), %v1091_v46 }
  0x9d   : > { %816 = vmatpush3.bf16.msra.mxu0 (!%p760_p11), %v917_v47 }
  0x9e   : > { %817 = vmatprep.subr.bf16.mxu0 (!%p760_p11), %v1091_v46 }
  0xa1   : > { %818 = vmatpush3.bf16.msra.mxu0 (!%p760_p11), %v918_v48 }
  0xa2   : > { %819 = vmatprep.subr.bf16.mxu0 (!%p760_p11), %v1091_v46 }
  0xa5   : > { %820 = vmatpush3.bf16.msra.mxu0 (!%p760_p11), %v919_v49 }
  0xa6   : > { %821 = vmatprep.subr.bf16.mxu0 (!%p760_p11), %v1091_v46 }
  0xa9   : > { %822 = vmatpush3.bf16.msra.mxu0 (!%p760_p11), %v920_v50 }
  0xaa   : > { %823 = vmatprep.subr.bf16.mxu0 (!%p760_p11), %v1091_v46 }
  0xad   : > { %824 = vmatpush3.bf16.msra.mxu0 (!%p760_p11), %v921_v51 }
  0xae   : > { %825 = vmatprep.subr.bf16.mxu0 (!%p760_p11), %v1091_v46 }
  0xb1   : > { %826 = vmatpush3.bf16.msra.mxu0 (!%p760_p11), %v922_v52 }
  0xb2   : > { %827 = vmatprep.subr.bf16.mxu0 (!%p760_p11), %v1091_v46 }
  0xb5   : > { %828 = vmatpush3.bf16.msra.mxu0 (!%p760_p11), %v923_v53 }
 0x16b   : > { %v468_v13 = vpop.f32.mrb[0].mxu0 }
 0x16c   : > { %v469_v14 = vadd.f32 %v749_v12, %v468_v13  ;;  %v811_v15 = vpop.f32.mrb[1].mxu0 }
 0x16d   : > { %v471_v16 = vpop.f32.mrb[2].mxu0 }
 0x16e   : > { %v474_v17 = vmax.f32 %v469_v14, 0.0  ;;  %v812_v18 = vpop.f32.mrb[3].mxu0 }
 0x170   : > { %v475_v19 = vrot.slane %v474_v17, 4  ;;  %v481_v20 = vmul.f32 %v474_v17, %v474_v17 }
 0x172   : > { %v476_v21 = vadd.f32 %v475_v19, %v474_v17  ;;  %v482_v22 = vrot.slane %v481_v20, 4 }
 0x174   : > { %v477_v23 = vrot.slane %v476_v21, 2  ;;  %v483_v24 = vadd.f32 %v482_v22, %v481_v20 }
 0x176   : > { %v478_v25 = vadd.f32 %v477_v23, %v476_v21  ;;  %v484_v26 = vrot.slane %v483_v24, 2 }
 0x178   : > { %v479_v27 = vrot.slane %v478_v25, 1  ;;  %v485_v28 = vadd.f32 %v484_v26, %v483_v24 }
 0x17a   : > { %v480_v29 = vadd.f32 %v479_v27, %v478_v25  ;;  %v486_v30 = vrot.slane %v485_v28, 1 }
 0x17c   : > { %v487_v31 = vadd.f32 %v486_v30, %v485_v28  ;;  %v488_v32 = vmul.f32 0.125, %v480_v29 }
 0x17e   : > { %v489_v33 = vmul.f32 0.125, %v487_v31  ;;  %v490_v34 = vmul.f32 %v488_v32, %v488_v32  ;;  %v493_v38 = vsub.f32 %v474_v17, %v488_v32 }
 0x180   : > { %v491_v35 = vsub.f32 %v489_v33, %v490_v34 }
 0x182   : > { %v492_v36 = vmax.f32 %v491_v35, 0.0 }
 0x184   : > { %v494_v37 = vadd.f32 1e-05, %v492_v36 }
 0x186   : > { %914 = vrsqrt.f32 %v494_v37 }
 0x190   : > { %v915_v39 = vpop.eup %914 }
 0x191   : > { %v496_v41 = vmul.f32 %v915_v39, %v493_v38  ;;  %517 = sbr.rel (%p760_p11) target bundleno = 624 (0x270), region = 68 }
 0x193   : > { %v504_v43 = vmul.f32 %v758_v40, %v496_v41 }
 0x195   : > { %v512_v44 = vadd.f32 %v759_v42, %v504_v43 }
 0x197   : > { %513 = vst [vmem:[#allocation2] sm:$0xff] %v512_v44  ;;  %v518_v54 = vpack.c.bf16 (!%p760_p11), %v512_v44, %v512_v44 }
 0x199   : > { %830 = vmatmul.mubr.bf16.vlgmr.msra.gmra.mrb[0].mxu0 %v518_v54 }
 0x26c   : > { %v624_v56 = vpop.f32.mrb[0].mxu0 }
 0x26d   : > { %v625_v57 = vadd.f32 %v761_v55, %v624_v56  ;;  %v831_v58 = vpop.f32.mrb[1].mxu0 }
 0x26e   : > { %v627_v59 = vpop.f32.mrb[2].mxu0 }
 0x26f   : > { %630 = vst [vmem:[#allocation9] sm:$0xff] %v625_v57  ;;  %v832_v60 = vpop.f32.mrb[3].mxu0 }
 0x270 PF: > { %p863_p13 = scmp.eq.s32.totalorder %s1153_s28, 1  ;;  %s1093_s14 = smov [#allocation9]  }
 0x271   : > { %s638_s27 = sshll.u32 %s1093_s14, 4  ;;  %s639_s27 = int_to_ptr.vmem [resolvable:$true] %s638_s27 }
 0x272   : > { %s1010_s12 = scalar_lea.vmem %s639_s27, 128  ;;  %p1017_p0 = scmp.lt.s32.totalorder %s639_s27, %s639_s27 }
 0x273   : > { %p1011_p12 = scmp.ne.s32.totalorder %s639_s27, %s1010_s12  ;;  %p1018_p5 = scmp.lt.s32.totalorder %s1010_s12, %s1010_s12 }
 0x275   : > { %p1012_p8 = pnand %p1011_p12, %p863_p13  ;;  %p1019_p9 = por %p1018_p5, %p1017_p0 }
 0x277   : > { %p1013_p10 = pneg %p1012_p8 }
 0x279   : > { %p1020_p1 = pnand %p1019_p9, %p1013_p10 }
 0x27b   : > { %1023 = shalt.err (!%p1020_p1)
}
 0x27c   : > { %s1024_s22 = scalar_lea.hbm %s1393_s7, 128 }
 0x27d   : > { %p1025_p3 = scmp.ne.s32.totalorder %s1393_s7, %s1024_s22  ;;  %p1030_p4 = scmp.lt.u32.totalorder %s1024_s22, %s1393_s7 }
 0x27f   : > { %p1026_p2 = pnand %p1025_p3, %p863_p13 }
 0x281   : > { %p1027_p6 = pneg %p1026_p2 }
 0x283   : > { %p1032_p7 = pnand %p1030_p4, %p1027_p6 }
 0x285   : > { %1035 = shalt.err (!%p1032_p7)
}
 0x286   : > { %844 = dma.vmem_to_hbm [thread:$0]  (%p863_p13), %s639_s27, 128, %s1393_s7, [#allocation5]  }
 0x287   : > { %1065 = dma.done.wait (%p863_p13), [#allocation5], 128  }
 0x288   : > { %1067 = vsyncadd (%p863_p13), [#allocation5], 4294967168 }
 0x289 PF: > { %s1415_s27 = sld [smem:[#allocation14_spill]]  ;;  %s1416_s29 = sld [smem:[#allocation15_spill]] }
 0x28a   : > { %s1417_s24 = smov %s1074_s25  ;;  %s1418_s25 = smov %s1078_s26 }
 0x28f   : > { %p19_p11 = scmp.ge.s32.totalorder %s1415_s27, 4   ;;  %s1419_s26 = smov %s1416_s29 }
 0x291   :  { %21 = sbr.rel (!%p19_p11) target bundleno = 5 (0x5), region = 111 }
 0x298   :  { %651 = vsyncpa [#allocation4], 1 }
 0x299   :  { %653 = vsyncpa [#allocation4 + $0x1], 1 }
 0x29a   :  { %654 = vsyncpa [#allocation7], 1 }
 0x29b   :  { %656 = vsyncpa [#allocation7 + $0x1], 1 }
 0x29c   :  { %657 = vsyncpa [#allocation5], 1 }
 0x29d   :  { %659 = vsyncpa [#allocation5 + $0x1], 1 }

</bundles_post_ra>
